<compile_context>
chip_gen: v5e
topology: v5e:2x2
jax: 0.10.0
libtpu: 0.0.40
codegen_flags: <defaults>
</compile_context>

<pallas_src>
import jax
import jax.numpy as jnp
from jax.experimental import pallas as pl
from jax.experimental.pallas import tpu as pltpu

K = 5             # conv kernel size
P = K // 2        # replicate padding per side
CH = 16           # hidden channel count of all three convs
BN_EPS = 1e-5     # nn.BatchNorm1d default eps
NORM_EPS = 1e-12  # F.normalize default eps


def _round_up(a, m):
    return (a + m - 1) // m * m


# ------------------------- in-kernel helpers -------------------------

def _roll0(x, shift):
    """Static sublane rotation along axis 0 (shift normalized to [0, R))."""
    return pltpu.roll(x, shift=shift % x.shape[0], axis=0)


def _edge_masks(R, L):
    """(R,1) f32 {0,1} masks: row is first / last row of its sample (in-kernel iota)."""
    lpos = jax.lax.broadcasted_iota(jnp.int32, (R, 1), 0) % L
    isf = (lpos == 0).astype(jnp.float32)
    isl = (lpos == (L - 1)).astype(jnp.float32)
    return isf, isl


def _taps(x, isfirst, islast):
    """[x(-2), x(-1), x, x(+1), x(+2)] with per-sample replicate clamping.

    Shifts are XLU rolls (jnp.roll semantics: roll(x, 1)[r] == x[r-1]); the
    chained isfirst/islast blends clamp at sample boundaries AND mask the
    circular-wrap rows (global first/last rows are sample boundaries too).
    """
    take_next = 1.0 - islast
    take_prev = 1.0 - isfirst

    nxt = _roll0(x, -1)                              # ~ x[r + 1] (circular)
    prv = _roll0(x, 1)                               # ~ x[r - 1] (circular)
    xp1 = islast * x + take_next * nxt               # x[min(l + 1, L - 1)]
    xm1 = isfirst * x + take_prev * prv              # x[max(l - 1, 0)]

    xp2 = islast * xp1 + take_next * _roll0(xp1, -1)  # x[min(l + 2, L - 1)]
    xm2 = isfirst * xm1 + take_prev * _roll0(xm1, 1)  # x[max(l - 2, 0)]
    return [xm2, xm1, x, xp1, xp2]


def _conv_relu(x, isfirst, islast, w, b):
    """Replicate-padded Conv1d + bias + ReLU for the whole batch in one matmul.

    x: (R, Cin);  w: (K*Cin, CH) with w[t*Cin + ci, co] == W_torch[co, ci, t]
    """
    slab = jnp.concatenate(_taps(x, isfirst, islast), axis=1)       # (R, K*Cin)
    y = jnp.dot(slab, w, preferred_element_type=jnp.float32) + b
    return jnp.maximum(y, 0.0)


def _batchnorm(y, g, beta):
    """Training-mode BatchNorm1d, single-pass stats (biased variance)."""
    inv_cnt = 1.0 / y.shape[0]
    mean = jnp.sum(y, axis=0, keepdims=True) * inv_cnt
    ex2 = jnp.sum(y * y, axis=0, keepdims=True) * inv_cnt
    var = jnp.maximum(ex2 - mean * mean, 0.0)
    scale = g * jax.lax.rsqrt(var + BN_EPS)
    shift = beta - mean * scale
    return y * scale + shift


def _maxpool2(y, pool_ref):
    """MaxPool1d(kernel_size=2, stride=2) along the (flattened) length axis."""
    R, C = y.shape
    pool_ref[pl.ds(0, R), pl.ds(0, C)] = y
    even = pool_ref[pl.ds(0, R // 2, stride=2), pl.ds(0, C)]
    odd = pool_ref[pl.ds(1, R // 2, stride=2), pl.ds(0, C)]
    return jnp.maximum(even, odd)


# ------------------------------ kernel -------------------------------

def _make_kernel(N, Cin, L):
    L2, L3 = L // 2, L // 4
    KC1 = K * Cin
    KCH = K * CH
    OW1 = 0
    OW2 = _round_up(KC1, 8)
    OW3 = OW2 + KCH
    OV = OW3 + KCH          # first of the 9 bias/gamma/beta rows

    def kernel(x_ref, pk_ref, o_ref, pool_ref):
        # unpack the coalesced parameter slab (static slices; loads only)
        w1 = pk_ref[pl.ds(OW1, KC1), :]
        w2 = pk_ref[pl.ds(OW2, KCH), :]
        w3 = pk_ref[pl.ds(OW3, KCH), :]

        def vrow(i):
            return pk_ref[pl.ds(OV + i, 1), :]

        b1, g1, be1 = vrow(0), vrow(1), vrow(2)
        b2, g2, be2 = vrow(3), vrow(4), vrow(5)
        b3, g3, be3 = vrow(6), vrow(7), vrow(8)

        # per-stage sample-boundary masks, generated in-kernel
        if1, il1 = _edge_masks(N * L, L)
        if2, il2 = _edge_masks(N * L2, L2)
        if3, il3 = _edge_masks(N * L3, L3)

        x = x_ref[...]
        # block 1: conv -> relu -> bn -> maxpool
        y = _conv_relu(x, if1, il1, w1, b1)
        y = _batchnorm(y, g1, be1)
        y = _maxpool2(y, pool_ref)
        # block 2: conv -> relu -> bn -> maxpool
        y = _conv_relu(y, if2, il2, w2, b2)
        y = _batchnorm(y, g2, be2)
        y = _maxpool2(y, pool_ref)
        # block 3: conv -> relu -> bn   (no pool)
        y = _conv_relu(y, if3, il3, w3, b3)
        y = _batchnorm(y, g3, be3)

        o_ref[...] = y

    return kernel


# ------------------------------ wrapper ------------------------------

def cnn_features_forward(x_ncl, params):
    N, Cin, L = x_ncl.shape
    assert L % 4 == 0, "length must survive two MaxPool1d(2)"
    L2, L3 = L // 2, L // 4
    # sublane-roll / strided-pool friendliness for this demo configuration
    assert (N * L3) % 8 == 0, "flattened rows at every stage must be sublane-aligned"
    (W1, b1, g1, be1, W2, b2, g2, be2, W3, b3, g3, be3) = params
    f32 = jnp.float32

    # (N, Cin, L) -> flattened length-major (N*L, Cin)
    x2d = jnp.transpose(x_ncl, (0, 2, 1)).reshape(N * L, Cin).astype(f32)

    def im2col_w(W):   # (Cout, Cin, K) -> (K*Cin, Cout), tap-major rows
        co, ci, k = W.shape
        return jnp.transpose(W, (2, 1, 0)).reshape(k * ci, co).astype(f32)

    # pack ALL parameters into one (rows, CH) slab: 3 im2col weight matrices
    # (each padded to an 8-row multiple) followed by 9 bias/gamma/beta rows.
    KC1 = K * Cin
    KCH = K * CH
    OW2 = _round_up(KC1, 8)
    OW3 = OW2 + KCH
    OV = OW3 + KCH
    PK_ROWS = OV + 9

    pack = jnp.zeros((PK_ROWS, CH), f32)
    pack = pack.at[0:KC1].set(im2col_w(W1))
    pack = pack.at[OW2:OW2 + KCH].set(im2col_w(W2))
    pack = pack.at[OW3:OW3 + KCH].set(im2col_w(W3))
    vrows = jnp.stack([b1, g1, be1, b2, g2, be2, b3, g3, be3]).astype(f32)  # (9, CH)
    pack = pack.at[OV:OV + 9].set(vrows)

    kernel = _make_kernel(N, Cin, L)

    out2d = pl.pallas_call(
        kernel,
        out_shape=jax.ShapeDtypeStruct((N * L3, CH), f32),
        grid=(1,),
        in_specs=[pl.BlockSpec((N * L, Cin), lambda i: (0, 0)),
                  pl.BlockSpec((PK_ROWS, CH), lambda i: (0, 0))],
        out_specs=pl.BlockSpec((N * L3, CH), lambda i: (0, 0)),
        scratch_shapes=[pltpu.VMEM((N * L, CH), f32)],   # maxpool staging only
        compiler_params=pltpu.CompilerParams(
            dimension_semantics=("arbitrary",),
            vmem_limit_bytes=64 * 1024 * 1024),
    )(x2d, pack)

    # PyTorch flatten(start_dim=1) on (N, CH, L3): flat index = c * L3 + l
    feats = out2d.reshape(N, L3, CH).transpose(0, 2, 1).reshape(N, CH * L3)
    # F.normalize(dim=1) as a trivial XLA epilogue (per perf review: avoids the
    # O(N^2) in-kernel segment matmuls of the previous version).
    nrm = jnp.sqrt(jnp.sum(feats * feats, axis=1, keepdims=True))
    return feats / jnp.maximum(nrm, NORM_EPS)


# -------------------- deterministic parameter init -------------------

def init_params(key, in_features):
    ks = jax.random.split(key, 12)

    def conv_p(kw, kb, cin):
        w = 0.2 * jax.random.normal(kw, (CH, cin, K), jnp.float32)
        b = 0.1 * jax.random.normal(kb, (CH,), jnp.float32)
        return w, b

    def bn_p(kg, kb):
        g = 1.0 + 0.1 * jax.random.normal(kg, (CH,), jnp.float32)
        be = 0.1 * jax.random.normal(kb, (CH,), jnp.float32)
        return g, be

    W1, b1 = conv_p(ks[0], ks[1], in_features)
    g1, be1 = bn_p(ks[2], ks[3])
    W2, b2 = conv_p(ks[4], ks[5], CH)
    g2, be2 = bn_p(ks[6], ks[7])
    W3, b3 = conv_p(ks[8], ks[9], CH)
    g3, be3 = bn_p(ks[10], ks[11])
    return (W1, b1, g1, be1, W2, b2, g2, be2, W3, b3, g3, be3)


# ----------------------- plain-JAX reference --------------------------

def ref_forward(x_ncl, params):
    (W1, b1, g1, be1, W2, b2, g2, be2, W3, b3, g3, be3) = params

    def conv(x, W, b):
        xp = jnp.concatenate(
            [jnp.repeat(x[:, :, :1], P, axis=2), x, jnp.repeat(x[:, :, -1:], P, axis=2)],
            axis=2)
        y = jax.lax.conv_general_dilated(
            xp, W, window_strides=(1,), padding='VALID',
            dimension_numbers=('NCH', 'OIH', 'NCH'),
            precision=jax.lax.Precision.HIGHEST)
        return y + b[None, :, None]

    def bn(x, g, be):
        mean = jnp.mean(x, axis=(0, 2), keepdims=True)
        var = jnp.mean((x - mean) ** 2, axis=(0, 2), keepdims=True)
        return (x - mean) / jnp.sqrt(var + BN_EPS) * g[None, :, None] + be[None, :, None]

    def pool(x):
        n, c, l = x.shape
        return jnp.max(x.reshape(n, c, l // 2, 2), axis=-1)

    y = pool(bn(jax.nn.relu(conv(x_ncl, W1, b1)), g1, be1))
    y = pool(bn(jax.nn.relu(conv(y, W2, b2)), g2, be2))
    y = bn(jax.nn.relu(conv(y, W3, b3)), g3, be3)
    f = y.reshape(y.shape[0], -1)
    nrm = jnp.sqrt(jnp.sum(f * f, axis=1, keepdims=True))
    return f / jnp.maximum(nrm, NORM_EPS)


# -------------------------------- main --------------------------------

if __name__ == "__main__":
    key = jax.random.PRNGKey(0)
    k_params, k_x = jax.random.split(key)

    N, Cin, L = 2, 4, 16                       # batch=2, in_features=4, seq_len=16
    params = init_params(k_params, Cin)
    x = jax.random.normal(k_x, (N, Cin, L), jnp.float32)

    out = cnn_features_forward(x, params)
    out = jax.block_until_ready(out)

    ref = ref_forward(x, params)
    assert out.shape == (N, CH * (L // 4)), out.shape
    if not jnp.allclose(out, ref, atol=2e-3, rtol=2e-3):
        max_err = float(jnp.max(jnp.abs(out - ref)))
        raise AssertionError(f"kernel/reference mismatch, max abs err = {max_err}")

    print("KERNEL_OK")
</pallas_src>

<mosaic_0001>
module attributes {stable_mosaic.version = 11 : i64} {
  func.func @kernel(%arg0: i32, %arg1: memref<32x4xf32, #tpu.memory_space<vmem>>, %arg2: memref<193x16xf32, #tpu.memory_space<vmem>>, %arg3: memref<8x16xf32, #tpu.memory_space<vmem>>, %arg4: memref<32x16xf32, #tpu.memory_space<vmem>>) attributes {dimension_semantics = [#tpu.dimension_semantics<arbitrary>], iteration_bounds = array<i64: 1>, scalar_prefetch = 0 : i64, scratch_operands = 1 : i64, tpu.core_type = #tpu.core_type<tc>, window_params = [{pipeline_mode = #tpu.pipeline_mode<synchronous>, transform_indices = @transform_0, window_bounds = array<i64: 32, 4>}, {pipeline_mode = #tpu.pipeline_mode<synchronous>, transform_indices = @transform_1, window_bounds = array<i64: 193, 16>}, {pipeline_mode = #tpu.pipeline_mode<synchronous>, transform_indices = @transform_2, window_bounds = array<i64: 8, 16>}]} {
    %c0 = arith.constant 0 : index
    %c0_0 = arith.constant 0 : index
    %0 = vector.load %arg2[%c0, %c0_0] : memref<193x16xf32, #tpu.memory_space<vmem>>, vector<20x16xf32>
    %c24 = arith.constant 24 : index
    %c0_1 = arith.constant 0 : index
    %1 = vector.load %arg2[%c24, %c0_1] : memref<193x16xf32, #tpu.memory_space<vmem>>, vector<80x16xf32>
    %c104 = arith.constant 104 : index
    %c0_2 = arith.constant 0 : index
    %2 = vector.load %arg2[%c104, %c0_2] : memref<193x16xf32, #tpu.memory_space<vmem>>, vector<80x16xf32>
    %c184 = arith.constant 184 : index
    %c0_3 = arith.constant 0 : index
    %3 = vector.load %arg2[%c184, %c0_3] : memref<193x16xf32, #tpu.memory_space<vmem>>, vector<1x16xf32>
    %c185 = arith.constant 185 : index
    %c0_4 = arith.constant 0 : index
    %4 = vector.load %arg2[%c185, %c0_4] : memref<193x16xf32, #tpu.memory_space<vmem>>, vector<1x16xf32>
    %c186 = arith.constant 186 : index
    %c0_5 = arith.constant 0 : index
    %5 = vector.load %arg2[%c186, %c0_5] : memref<193x16xf32, #tpu.memory_space<vmem>>, vector<1x16xf32>
    %c187 = arith.constant 187 : index
    %c0_6 = arith.constant 0 : index
    %6 = vector.load %arg2[%c187, %c0_6] : memref<193x16xf32, #tpu.memory_space<vmem>>, vector<1x16xf32>
    %c188 = arith.constant 188 : index
    %c0_7 = arith.constant 0 : index
    %7 = vector.load %arg2[%c188, %c0_7] : memref<193x16xf32, #tpu.memory_space<vmem>>, vector<1x16xf32>
    %c189 = arith.constant 189 : index
    %c0_8 = arith.constant 0 : index
    %8 = vector.load %arg2[%c189, %c0_8] : memref<193x16xf32, #tpu.memory_space<vmem>>, vector<1x16xf32>
    %c190 = arith.constant 190 : index
    %c0_9 = arith.constant 0 : index
    %9 = vector.load %arg2[%c190, %c0_9] : memref<193x16xf32, #tpu.memory_space<vmem>>, vector<1x16xf32>
    %c191 = arith.constant 191 : index
    %c0_10 = arith.constant 0 : index
    %10 = vector.load %arg2[%c191, %c0_10] : memref<193x16xf32, #tpu.memory_space<vmem>>, vector<1x16xf32>
    %c192 = arith.constant 192 : index
    %c0_11 = arith.constant 0 : index
    %11 = vector.load %arg2[%c192, %c0_11] : memref<193x16xf32, #tpu.memory_space<vmem>>, vector<1x16xf32>
    %12 = tpu.iota {dimensions = array<i32: 0>} : vector<32x1xi32>
    %c16_i32 = arith.constant 16 : i32
    %c0_i32 = arith.constant 0 : i32
    %13 = arith.cmpi eq, %c16_i32, %c0_i32 : i32
    %c1_i32 = arith.constant 1 : i32
    %14 = arith.select %13, %c1_i32, %c16_i32 : i32
    %15 = vector.broadcast %14 : i32 to vector<32x1xi32>
    %16 = arith.remsi %12, %15 : vector<32x1xi32>
    %c0_i32_12 = arith.constant 0 : i32
    %17 = vector.broadcast %c0_i32_12 : i32 to vector<32x1xi32>
    %18 = arith.cmpi ne, %16, %17 : vector<32x1xi32>
    %c0_i32_13 = arith.constant 0 : i32
    %19 = vector.broadcast %c0_i32_13 : i32 to vector<32x1xi32>
    %20 = arith.cmpi slt, %16, %19 : vector<32x1xi32>
    %c0_i32_14 = arith.constant 0 : i32
    %21 = arith.cmpi slt, %14, %c0_i32_14 : i32
    %22 = vector.broadcast %21 : i1 to vector<32x1xi1>
    %23 = vector.broadcast %22 : vector<32x1xi1> to vector<32x1xi1>
    %24 = arith.xori %20, %23 : vector<32x1xi1>
    %25 = arith.andi %24, %18 : vector<32x1xi1>
    %26 = vector.broadcast %14 : i32 to vector<32x1xi32>
    %27 = arith.addi %16, %26 : vector<32x1xi32>
    %28 = arith.select %25, %27, %16 : vector<32x1xi1>, vector<32x1xi32>
    %c0_i32_15 = arith.constant 0 : i32
    %29 = vector.broadcast %c0_i32_15 : i32 to vector<32x1xi32>
    %30 = arith.cmpi eq, %28, %29 : vector<32x1xi32>
    %31 = arith.extui %30 : vector<32x1xi1> to vector<32x1xi32>
    %32 = arith.sitofp %31 : vector<32x1xi32> to vector<32x1xf32>
    %c15_i32 = arith.constant 15 : i32
    %33 = vector.broadcast %c15_i32 : i32 to vector<32x1xi32>
    %34 = arith.cmpi eq, %28, %33 : vector<32x1xi32>
    %35 = arith.extui %34 : vector<32x1xi1> to vector<32x1xi32>
    %36 = arith.sitofp %35 : vector<32x1xi32> to vector<32x1xf32>
    %37 = tpu.iota {dimensions = array<i32: 0>} : vector<16x1xi32>
    %c8_i32 = arith.constant 8 : i32
    %c0_i32_16 = arith.constant 0 : i32
    %38 = arith.cmpi eq, %c8_i32, %c0_i32_16 : i32
    %c1_i32_17 = arith.constant 1 : i32
    %39 = arith.select %38, %c1_i32_17, %c8_i32 : i32
    %40 = vector.broadcast %39 : i32 to vector<16x1xi32>
    %41 = arith.remsi %37, %40 : vector<16x1xi32>
    %c0_i32_18 = arith.constant 0 : i32
    %42 = vector.broadcast %c0_i32_18 : i32 to vector<16x1xi32>
    %43 = arith.cmpi ne, %41, %42 : vector<16x1xi32>
    %c0_i32_19 = arith.constant 0 : i32
    %44 = vector.broadcast %c0_i32_19 : i32 to vector<16x1xi32>
    %45 = arith.cmpi slt, %41, %44 : vector<16x1xi32>
    %c0_i32_20 = arith.constant 0 : i32
    %46 = arith.cmpi slt, %39, %c0_i32_20 : i32
    %47 = vector.broadcast %46 : i1 to vector<16x1xi1>
    %48 = vector.broadcast %47 : vector<16x1xi1> to vector<16x1xi1>
    %49 = arith.xori %45, %48 : vector<16x1xi1>
    %50 = arith.andi %49, %43 : vector<16x1xi1>
    %51 = vector.broadcast %39 : i32 to vector<16x1xi32>
    %52 = arith.addi %41, %51 : vector<16x1xi32>
    %53 = arith.select %50, %52, %41 : vector<16x1xi1>, vector<16x1xi32>
    %c0_i32_21 = arith.constant 0 : i32
    %54 = vector.broadcast %c0_i32_21 : i32 to vector<16x1xi32>
    %55 = arith.cmpi eq, %53, %54 : vector<16x1xi32>
    %56 = arith.extui %55 : vector<16x1xi1> to vector<16x1xi32>
    %57 = arith.sitofp %56 : vector<16x1xi32> to vector<16x1xf32>
    %c7_i32 = arith.constant 7 : i32
    %58 = vector.broadcast %c7_i32 : i32 to vector<16x1xi32>
    %59 = arith.cmpi eq, %53, %58 : vector<16x1xi32>
    %60 = arith.extui %59 : vector<16x1xi1> to vector<16x1xi32>
    %61 = arith.sitofp %60 : vector<16x1xi32> to vector<16x1xf32>
    %62 = tpu.iota {dimensions = array<i32: 0>} : vector<8x1xi32>
    %c4_i32 = arith.constant 4 : i32
    %c0_i32_22 = arith.constant 0 : i32
    %63 = arith.cmpi eq, %c4_i32, %c0_i32_22 : i32
    %c1_i32_23 = arith.constant 1 : i32
    %64 = arith.select %63, %c1_i32_23, %c4_i32 : i32
    %65 = vector.broadcast %64 : i32 to vector<8x1xi32>
    %66 = arith.remsi %62, %65 : vector<8x1xi32>
    %c0_i32_24 = arith.constant 0 : i32
    %67 = vector.broadcast %c0_i32_24 : i32 to vector<8x1xi32>
    %68 = arith.cmpi ne, %66, %67 : vector<8x1xi32>
    %c0_i32_25 = arith.constant 0 : i32
    %69 = vector.broadcast %c0_i32_25 : i32 to vector<8x1xi32>
    %70 = arith.cmpi slt, %66, %69 : vector<8x1xi32>
    %c0_i32_26 = arith.constant 0 : i32
    %71 = arith.cmpi slt, %64, %c0_i32_26 : i32
    %72 = vector.broadcast %71 : i1 to vector<8x1xi1>
    %73 = vector.broadcast %72 : vector<8x1xi1> to vector<8x1xi1>
    %74 = arith.xori %70, %73 : vector<8x1xi1>
    %75 = arith.andi %74, %68 : vector<8x1xi1>
    %76 = vector.broadcast %64 : i32 to vector<8x1xi32>
    %77 = arith.addi %66, %76 : vector<8x1xi32>
    %78 = arith.select %75, %77, %66 : vector<8x1xi1>, vector<8x1xi32>
    %c0_i32_27 = arith.constant 0 : i32
    %79 = vector.broadcast %c0_i32_27 : i32 to vector<8x1xi32>
    %80 = arith.cmpi eq, %78, %79 : vector<8x1xi32>
    %81 = arith.extui %80 : vector<8x1xi1> to vector<8x1xi32>
    %82 = arith.sitofp %81 : vector<8x1xi32> to vector<8x1xf32>
    %c3_i32 = arith.constant 3 : i32
    %83 = vector.broadcast %c3_i32 : i32 to vector<8x1xi32>
    %84 = arith.cmpi eq, %78, %83 : vector<8x1xi32>
    %85 = arith.extui %84 : vector<8x1xi1> to vector<8x1xi32>
    %86 = arith.sitofp %85 : vector<8x1xi32> to vector<8x1xf32>
    %c0_28 = arith.constant 0 : index
    %c0_29 = arith.constant 0 : index
    %87 = vector.load %arg1[%c0_28, %c0_29] : memref<32x4xf32, #tpu.memory_space<vmem>>, vector<32x4xf32>
    %cst = arith.constant 1.000000e+00 : f32
    %88 = vector.broadcast %cst : f32 to vector<32x1xf32>
    %89 = arith.subf %88, %36 : vector<32x1xf32>
    %cst_30 = arith.constant 1.000000e+00 : f32
    %90 = vector.broadcast %cst_30 : f32 to vector<32x1xf32>
    %91 = arith.subf %90, %32 : vector<32x1xf32>
    %c31_i32 = arith.constant 31 : i32
    %92 = tpu.dynamic_rotate %87 by %c31_i32 dim 0 : vector<32x4xf32>, i32 -> vector<32x4xf32>
    %c1_i32_31 = arith.constant 1 : i32
    %93 = tpu.dynamic_rotate %87 by %c1_i32_31 dim 0 : vector<32x4xf32>, i32 -> vector<32x4xf32>
    %94 = vector.broadcast %36 : vector<32x1xf32> to vector<32x4xf32>
    %95 = arith.mulf %94, %87 : vector<32x4xf32>
    %96 = vector.broadcast %89 : vector<32x1xf32> to vector<32x4xf32>
    %97 = arith.mulf %96, %92 : vector<32x4xf32>
    %98 = arith.addf %95, %97 : vector<32x4xf32>
    %99 = vector.broadcast %32 : vector<32x1xf32> to vector<32x4xf32>
    %100 = arith.mulf %99, %87 : vector<32x4xf32>
    %101 = vector.broadcast %91 : vector<32x1xf32> to vector<32x4xf32>
    %102 = arith.mulf %101, %93 : vector<32x4xf32>
    %103 = arith.addf %100, %102 : vector<32x4xf32>
    %104 = vector.broadcast %36 : vector<32x1xf32> to vector<32x4xf32>
    %105 = arith.mulf %104, %98 : vector<32x4xf32>
    %c31_i32_32 = arith.constant 31 : i32
    %106 = tpu.dynamic_rotate %98 by %c31_i32_32 dim 0 : vector<32x4xf32>, i32 -> vector<32x4xf32>
    %107 = vector.broadcast %89 : vector<32x1xf32> to vector<32x4xf32>
    %108 = arith.mulf %107, %106 : vector<32x4xf32>
    %109 = arith.addf %105, %108 : vector<32x4xf32>
    %110 = vector.broadcast %32 : vector<32x1xf32> to vector<32x4xf32>
    %111 = arith.mulf %110, %103 : vector<32x4xf32>
    %c1_i32_33 = arith.constant 1 : i32
    %112 = tpu.dynamic_rotate %103 by %c1_i32_33 dim 0 : vector<32x4xf32>, i32 -> vector<32x4xf32>
    %113 = vector.broadcast %91 : vector<32x1xf32> to vector<32x4xf32>
    %114 = arith.mulf %113, %112 : vector<32x4xf32>
    %115 = arith.addf %111, %114 : vector<32x4xf32>
    %116 = tpu.concatenate %115, %103, %87, %98, %109 in 1 : vector<32x4xf32>, vector<32x4xf32>, vector<32x4xf32>, vector<32x4xf32>, vector<32x4xf32> -> vector<32x20xf32>
    %cst_34 = arith.constant dense<0.000000e+00> : vector<32x16xf32>
    %117 = tpu.matmul %116, %0, %cst_34 {dimension_numbers = #tpu.dot_dimension_numbers<[1], [0], [0], [1], [0, 0, 1, 1], [], []>} : vector<32x20xf32>, vector<20x16xf32>, vector<32x16xf32> -> vector<32x16xf32>
    %118 = vector.broadcast %3 : vector<1x16xf32> to vector<32x16xf32>
    %119 = arith.addf %117, %118 : vector<32x16xf32>
    %cst_35 = arith.constant 0.000000e+00 : f32
    %120 = vector.broadcast %cst_35 : f32 to vector<32x16xf32>
    %121 = arith.maximumf %119, %120 : vector<32x16xf32>
    %cst_36 = arith.constant dense<0.000000e+00> : vector<16xf32>
    %122 = vector.multi_reduction <add>, %121, %cst_36 [0] : vector<32x16xf32> to vector<16xf32>
    %123 = vector.shape_cast %122 : vector<16xf32> to vector<1x16xf32>
    %cst_37 = arith.constant 3.125000e-02 : f32
    %124 = vector.broadcast %cst_37 : f32 to vector<1x16xf32>
    %125 = arith.mulf %123, %124 : vector<1x16xf32>
    %126 = arith.mulf %121, %121 : vector<32x16xf32>
    %cst_38 = arith.constant dense<0.000000e+00> : vector<16xf32>
    %127 = vector.multi_reduction <add>, %126, %cst_38 [0] : vector<32x16xf32> to vector<16xf32>
    %128 = vector.shape_cast %127 : vector<16xf32> to vector<1x16xf32>
    %cst_39 = arith.constant 3.125000e-02 : f32
    %129 = vector.broadcast %cst_39 : f32 to vector<1x16xf32>
    %130 = arith.mulf %128, %129 : vector<1x16xf32>
    %131 = arith.mulf %125, %125 : vector<1x16xf32>
    %132 = arith.subf %130, %131 : vector<1x16xf32>
    %cst_40 = arith.constant 0.000000e+00 : f32
    %133 = vector.broadcast %cst_40 : f32 to vector<1x16xf32>
    %134 = arith.maximumf %132, %133 : vector<1x16xf32>
    %cst_41 = arith.constant 9.99999974E-6 : f32
    %135 = vector.broadcast %cst_41 : f32 to vector<1x16xf32>
    %136 = arith.addf %134, %135 : vector<1x16xf32>
    %137 = math.rsqrt %136 : vector<1x16xf32>
    %138 = arith.mulf %4, %137 : vector<1x16xf32>
    %139 = arith.mulf %125, %138 : vector<1x16xf32>
    %140 = arith.subf %5, %139 : vector<1x16xf32>
    %141 = vector.broadcast %138 : vector<1x16xf32> to vector<32x16xf32>
    %142 = arith.mulf %121, %141 : vector<32x16xf32>
    %143 = vector.broadcast %140 : vector<1x16xf32> to vector<32x16xf32>
    %144 = arith.addf %142, %143 : vector<32x16xf32>
    %c0_42 = arith.constant 0 : index
    %c0_43 = arith.constant 0 : index
    %145 = vector.load %arg4[%c0_42, %c0_43] : memref<32x16xf32, #tpu.memory_space<vmem>>, vector<32x16xf32>
    tpu.vector_store %arg4[%c0_42, %c0_43], %144 {strides = array<i32>} : memref<32x16xf32, #tpu.memory_space<vmem>>, vector<32x16xf32>,
    %c0_44 = arith.constant 0 : index
    %c0_45 = arith.constant 0 : index
    %146 = tpu.strided_load %arg4[%c0_44, %c0_45] {strides = array<i32: 2, 1>} : memref<32x16xf32, #tpu.memory_space<vmem>>, vector<16x16xf32>
    %c1 = arith.constant 1 : index
    %c0_46 = arith.constant 0 : index
    %147 = tpu.strided_load %arg4[%c1, %c0_46] {strides = array<i32: 2, 1>} : memref<32x16xf32, #tpu.memory_space<vmem>>, vector<16x16xf32>
    %148 = arith.maximumf %146, %147 : vector<16x16xf32>
    %cst_47 = arith.constant 1.000000e+00 : f32
    %149 = vector.broadcast %cst_47 : f32 to vector<16x1xf32>
    %150 = arith.subf %149, %61 : vector<16x1xf32>
    %cst_48 = arith.constant 1.000000e+00 : f32
    %151 = vector.broadcast %cst_48 : f32 to vector<16x1xf32>
    %152 = arith.subf %151, %57 : vector<16x1xf32>
    %c15_i32_49 = arith.constant 15 : i32
    %153 = tpu.dynamic_rotate %148 by %c15_i32_49 dim 0 : vector<16x16xf32>, i32 -> vector<16x16xf32>
    %c1_i32_50 = arith.constant 1 : i32
    %154 = tpu.dynamic_rotate %148 by %c1_i32_50 dim 0 : vector<16x16xf32>, i32 -> vector<16x16xf32>
    %155 = vector.broadcast %61 : vector<16x1xf32> to vector<16x16xf32>
    %156 = arith.mulf %155, %148 : vector<16x16xf32>
    %157 = vector.broadcast %150 : vector<16x1xf32> to vector<16x16xf32>
    %158 = arith.mulf %157, %153 : vector<16x16xf32>
    %159 = arith.addf %156, %158 : vector<16x16xf32>
    %160 = vector.broadcast %57 : vector<16x1xf32> to vector<16x16xf32>
    %161 = arith.mulf %160, %148 : vector<16x16xf32>
    %162 = vector.broadcast %152 : vector<16x1xf32> to vector<16x16xf32>
    %163 = arith.mulf %162, %154 : vector<16x16xf32>
    %164 = arith.addf %161, %163 : vector<16x16xf32>
    %165 = vector.broadcast %61 : vector<16x1xf32> to vector<16x16xf32>
    %166 = arith.mulf %165, %159 : vector<16x16xf32>
    %c15_i32_51 = arith.constant 15 : i32
    %167 = tpu.dynamic_rotate %159 by %c15_i32_51 dim 0 : vector<16x16xf32>, i32 -> vector<16x16xf32>
    %168 = vector.broadcast %150 : vector<16x1xf32> to vector<16x16xf32>
    %169 = arith.mulf %168, %167 : vector<16x16xf32>
    %170 = arith.addf %166, %169 : vector<16x16xf32>
    %171 = vector.broadcast %57 : vector<16x1xf32> to vector<16x16xf32>
    %172 = arith.mulf %171, %164 : vector<16x16xf32>
    %c1_i32_52 = arith.constant 1 : i32
    %173 = tpu.dynamic_rotate %164 by %c1_i32_52 dim 0 : vector<16x16xf32>, i32 -> vector<16x16xf32>
    %174 = vector.broadcast %152 : vector<16x1xf32> to vector<16x16xf32>
    %175 = arith.mulf %174, %173 : vector<16x16xf32>
    %176 = arith.addf %172, %175 : vector<16x16xf32>
    %177 = tpu.concatenate %176, %164, %148, %159, %170 in 1 : vector<16x16xf32>, vector<16x16xf32>, vector<16x16xf32>, vector<16x16xf32>, vector<16x16xf32> -> vector<16x80xf32>
    %cst_53 = arith.constant dense<0.000000e+00> : vector<16x16xf32>
    %178 = tpu.matmul %177, %1, %cst_53 {dimension_numbers = #tpu.dot_dimension_numbers<[1], [0], [0], [1], [0, 0, 1, 1], [], []>} : vector<16x80xf32>, vector<80x16xf32>, vector<16x16xf32> -> vector<16x16xf32>
    %179 = vector.broadcast %6 : vector<1x16xf32> to vector<16x16xf32>
    %180 = arith.addf %178, %179 : vector<16x16xf32>
    %cst_54 = arith.constant 0.000000e+00 : f32
    %181 = vector.broadcast %cst_54 : f32 to vector<16x16xf32>
    %182 = arith.maximumf %180, %181 : vector<16x16xf32>
    %cst_55 = arith.constant dense<0.000000e+00> : vector<16xf32>
    %183 = vector.multi_reduction <add>, %182, %cst_55 [0] : vector<16x16xf32> to vector<16xf32>
    %184 = vector.shape_cast %183 : vector<16xf32> to vector<1x16xf32>
    %cst_56 = arith.constant 6.250000e-02 : f32
    %185 = vector.broadcast %cst_56 : f32 to vector<1x16xf32>
    %186 = arith.mulf %184, %185 : vector<1x16xf32>
    %187 = arith.mulf %182, %182 : vector<16x16xf32>
    %cst_57 = arith.constant dense<0.000000e+00> : vector<16xf32>
    %188 = vector.multi_reduction <add>, %187, %cst_57 [0] : vector<16x16xf32> to vector<16xf32>
    %189 = vector.shape_cast %188 : vector<16xf32> to vector<1x16xf32>
    %cst_58 = arith.constant 6.250000e-02 : f32
    %190 = vector.broadcast %cst_58 : f32 to vector<1x16xf32>
    %191 = arith.mulf %189, %190 : vector<1x16xf32>
    %192 = arith.mulf %186, %186 : vector<1x16xf32>
    %193 = arith.subf %191, %192 : vector<1x16xf32>
    %cst_59 = arith.constant 0.000000e+00 : f32
    %194 = vector.broadcast %cst_59 : f32 to vector<1x16xf32>
    %195 = arith.maximumf %193, %194 : vector<1x16xf32>
    %cst_60 = arith.constant 9.99999974E-6 : f32
    %196 = vector.broadcast %cst_60 : f32 to vector<1x16xf32>
    %197 = arith.addf %195, %196 : vector<1x16xf32>
    %198 = math.rsqrt %197 : vector<1x16xf32>
    %199 = arith.mulf %7, %198 : vector<1x16xf32>
    %200 = arith.mulf %186, %199 : vector<1x16xf32>
    %201 = arith.subf %8, %200 : vector<1x16xf32>
    %202 = vector.broadcast %199 : vector<1x16xf32> to vector<16x16xf32>
    %203 = arith.mulf %182, %202 : vector<16x16xf32>
    %204 = vector.broadcast %201 : vector<1x16xf32> to vector<16x16xf32>
    %205 = arith.addf %203, %204 : vector<16x16xf32>
    %c0_61 = arith.constant 0 : index
    %c0_62 = arith.constant 0 : index
    %206 = vector.load %arg4[%c0_61, %c0_62] : memref<32x16xf32, #tpu.memory_space<vmem>>, vector<16x16xf32>
    tpu.vector_store %arg4[%c0_61, %c0_62], %205 {strides = array<i32>} : memref<32x16xf32, #tpu.memory_space<vmem>>, vector<16x16xf32>,
    %c0_63 = arith.constant 0 : index
    %c0_64 = arith.constant 0 : index
    %207 = tpu.strided_load %arg4[%c0_63, %c0_64] {strides = array<i32: 2, 1>} : memref<32x16xf32, #tpu.memory_space<vmem>>, vector<8x16xf32>
    %c1_65 = arith.constant 1 : index
    %c0_66 = arith.constant 0 : index
    %208 = tpu.strided_load %arg4[%c1_65, %c0_66] {strides = array<i32: 2, 1>} : memref<32x16xf32, #tpu.memory_space<vmem>>, vector<8x16xf32>
    %209 = arith.maximumf %207, %208 : vector<8x16xf32>
    %cst_67 = arith.constant 1.000000e+00 : f32
    %210 = vector.broadcast %cst_67 : f32 to vector<8x1xf32>
    %211 = arith.subf %210, %86 : vector<8x1xf32>
    %cst_68 = arith.constant 1.000000e+00 : f32
    %212 = vector.broadcast %cst_68 : f32 to vector<8x1xf32>
    %213 = arith.subf %212, %82 : vector<8x1xf32>
    %c7_i32_69 = arith.constant 7 : i32
    %214 = tpu.dynamic_rotate %209 by %c7_i32_69 dim 0 : vector<8x16xf32>, i32 -> vector<8x16xf32>
    %c1_i32_70 = arith.constant 1 : i32
    %215 = tpu.dynamic_rotate %209 by %c1_i32_70 dim 0 : vector<8x16xf32>, i32 -> vector<8x16xf32>
    %216 = vector.broadcast %86 : vector<8x1xf32> to vector<8x16xf32>
    %217 = arith.mulf %216, %209 : vector<8x16xf32>
    %218 = vector.broadcast %211 : vector<8x1xf32> to vector<8x16xf32>
    %219 = arith.mulf %218, %214 : vector<8x16xf32>
    %220 = arith.addf %217, %219 : vector<8x16xf32>
    %221 = vector.broadcast %82 : vector<8x1xf32> to vector<8x16xf32>
    %222 = arith.mulf %221, %209 : vector<8x16xf32>
    %223 = vector.broadcast %213 : vector<8x1xf32> to vector<8x16xf32>
    %224 = arith.mulf %223, %215 : vector<8x16xf32>
    %225 = arith.addf %222, %224 : vector<8x16xf32>
    %226 = vector.broadcast %86 : vector<8x1xf32> to vector<8x16xf32>
    %227 = arith.mulf %226, %220 : vector<8x16xf32>
    %c7_i32_71 = arith.constant 7 : i32
    %228 = tpu.dynamic_rotate %220 by %c7_i32_71 dim 0 : vector<8x16xf32>, i32 -> vector<8x16xf32>
    %229 = vector.broadcast %211 : vector<8x1xf32> to vector<8x16xf32>
    %230 = arith.mulf %229, %228 : vector<8x16xf32>
    %231 = arith.addf %227, %230 : vector<8x16xf32>
    %232 = vector.broadcast %82 : vector<8x1xf32> to vector<8x16xf32>
    %233 = arith.mulf %232, %225 : vector<8x16xf32>
    %c1_i32_72 = arith.constant 1 : i32
    %234 = tpu.dynamic_rotate %225 by %c1_i32_72 dim 0 : vector<8x16xf32>, i32 -> vector<8x16xf32>
    %235 = vector.broadcast %213 : vector<8x1xf32> to vector<8x16xf32>
    %236 = arith.mulf %235, %234 : vector<8x16xf32>
    %237 = arith.addf %233, %236 : vector<8x16xf32>
    %238 = tpu.concatenate %237, %225, %209, %220, %231 in 1 : vector<8x16xf32>, vector<8x16xf32>, vector<8x16xf32>, vector<8x16xf32>, vector<8x16xf32> -> vector<8x80xf32>
    %cst_73 = arith.constant dense<0.000000e+00> : vector<8x16xf32>
    %239 = tpu.matmul %238, %2, %cst_73 {dimension_numbers = #tpu.dot_dimension_numbers<[1], [0], [0], [1], [0, 0, 1, 1], [], []>} : vector<8x80xf32>, vector<80x16xf32>, vector<8x16xf32> -> vector<8x16xf32>
    %240 = vector.broadcast %9 : vector<1x16xf32> to vector<8x16xf32>
    %241 = arith.addf %239, %240 : vector<8x16xf32>
    %cst_74 = arith.constant 0.000000e+00 : f32
    %242 = vector.broadcast %cst_74 : f32 to vector<8x16xf32>
    %243 = arith.maximumf %241, %242 : vector<8x16xf32>
    %cst_75 = arith.constant dense<0.000000e+00> : vector<16xf32>
    %244 = vector.multi_reduction <add>, %243, %cst_75 [0] : vector<8x16xf32> to vector<16xf32>
    %245 = vector.shape_cast %244 : vector<16xf32> to vector<1x16xf32>
    %cst_76 = arith.constant 1.250000e-01 : f32
    %246 = vector.broadcast %cst_76 : f32 to vector<1x16xf32>
    %247 = arith.mulf %245, %246 : vector<1x16xf32>
    %248 = arith.mulf %243, %243 : vector<8x16xf32>
    %cst_77 = arith.constant dense<0.000000e+00> : vector<16xf32>
    %249 = vector.multi_reduction <add>, %248, %cst_77 [0] : vector<8x16xf32> to vector<16xf32>
    %250 = vector.shape_cast %249 : vector<16xf32> to vector<1x16xf32>
    %cst_78 = arith.constant 1.250000e-01 : f32
    %251 = vector.broadcast %cst_78 : f32 to vector<1x16xf32>
    %252 = arith.mulf %250, %251 : vector<1x16xf32>
    %253 = arith.mulf %247, %247 : vector<1x16xf32>
    %254 = arith.subf %252, %253 : vector<1x16xf32>
    %cst_79 = arith.constant 0.000000e+00 : f32
    %255 = vector.broadcast %cst_79 : f32 to vector<1x16xf32>
    %256 = arith.maximumf %254, %255 : vector<1x16xf32>
    %cst_80 = arith.constant 9.99999974E-6 : f32
    %257 = vector.broadcast %cst_80 : f32 to vector<1x16xf32>
    %258 = arith.addf %256, %257 : vector<1x16xf32>
    %259 = math.rsqrt %258 : vector<1x16xf32>
    %260 = arith.mulf %10, %259 : vector<1x16xf32>
    %261 = arith.mulf %247, %260 : vector<1x16xf32>
    %262 = arith.subf %11, %261 : vector<1x16xf32>
    %263 = vector.broadcast %260 : vector<1x16xf32> to vector<8x16xf32>
    %264 = arith.mulf %243, %263 : vector<8x16xf32>
    %265 = vector.broadcast %262 : vector<1x16xf32> to vector<8x16xf32>
    %266 = arith.addf %264, %265 : vector<8x16xf32>
    %c0_81 = arith.constant 0 : index
    %c0_82 = arith.constant 0 : index
    %267 = vector.load %arg3[%c0_81, %c0_82] : memref<8x16xf32, #tpu.memory_space<vmem>>, vector<8x16xf32>
    tpu.vector_store %arg3[%c0_81, %c0_82], %266 {strides = array<i32>} : memref<8x16xf32, #tpu.memory_space<vmem>>, vector<8x16xf32>,
    return
  }
  func.func @transform_0(%arg0: i32) -> (i32, i32) {
    %c0_i32 = arith.constant 0 : i32
    %c0_i32_0 = arith.constant 0 : i32
    %c0_i32_1 = arith.constant 0 : i32
    return %c0_i32, %c0_i32_0 : i32, i32
  }
  func.func @transform_1(%arg0: i32) -> (i32, i32) {
    %c0_i32 = arith.constant 0 : i32
    %c0_i32_0 = arith.constant 0 : i32
    %c0_i32_1 = arith.constant 0 : i32
    return %c0_i32, %c0_i32_0 : i32, i32
  }
  func.func @transform_2(%arg0: i32) -> (i32, i32) {
    %c0_i32 = arith.constant 0 : i32
    %c0_i32_0 = arith.constant 0 : i32
    %c0_i32_1 = arith.constant 0 : i32
    return %c0_i32, %c0_i32_0 : i32, i32
  }
}

</mosaic_0001>

<bundles_post_ra>
// kernel: tpu_custom_call.1
= control target key start
LH: loop header
LB: loop body
LE: loop exit
PB: predicated region body
PF: predicated region fallthrough
CT: control target
= control target key end

     0   :  { %v44_v1 = vlaneseq  ;;  %s839_s15 = smov 8   ;;  %s1196_s0 = inlined_call_operand.vmem [shape: f32[32,4], index: 0, kind: input, shape index: {}]   ;;  %s1197_s1 = inlined_call_operand.vmem [shape: f32[193,16], index: 1, kind: input, shape index: {}]   ;;  %s1198_s2 = inlined_call_operand.hbm [shape: f32[8,16], index: 2, kind: output, shape index: {}]  }
   0x1   :  { %v866_v0 = vld [vmem:[%s1196_s0 + $0x8] sm:$0xff]  ;;  %v871_v2 = vld [vmem:[%s1196_s0] sm:$0xff]  ;;  %v177_v3 = vld [vmem:[%s1196_s0 + $0x10] sm:$0xff] }
   0x2   :  { %291 = vrot.lane.b32.xlu0 %v866_v0, %s839_s15  ;;  %v196_v4 = vrot.slane %v871_v2, 7  ;;  %v197_v5 = vrot.slane %v866_v0, 7  ;;  %v883_v6 = vld [vmem:[%s1196_s0 + $0x18] sm:$0xff]  ;;  %293 = vrot.lane.b32.xlu2 %v177_v3, %s839_s15  ;;  %v886_v7 = vshrl.u32 %v44_v1, 7  ;;  %v218_v8 = vmul.f32 0.0, %v866_v0 }
   0x3   :  { %v188_v9 = vrot.slane %v866_v0, 1  ;;  %v190_v10 = vrot.slane %v883_v6, 1  ;;  %v189_v11 = vrot.slane %v177_v3, 1  ;;  %v187_v12 = vrot.slane %v871_v2, 1 }
   0x4   :  { %v198_v13 = vrot.slane %v177_v3, 7  ;;  %v199_v14 = vrot.slane %v883_v6, 7  ;;  %vm200_vm0 = vcmp.lt.s32.totalorder %v886_v7, 1  ;;  %v895_v15 = vadd.s32 8, %v886_v7 }
   0x5   :  { %v207_v16 = vmul.f32 0.0, %v177_v3  ;;  %v48_v17 = vadd.s32 24, %v886_v7  ;;  %v203_v18 = vsel %vm200_vm0, %v196_v4, %v197_v5  ;;  %vm191_vm1 = vcmp.lt.s32.totalorder %v886_v7, 7 }
   0x6   :  { %v220_v19 = vmul.f32 0.0, %v883_v6 }
   0x7   :  { %7 = vsyncpa [#allocation4], 0  ;;  %v904_v20 = vadd.f32 %v218_v8, %v203_v18  ;;  %v60_v21 = vand.u32 15, %v895_v15  ;;  %v192_v22 = vsel %vm191_vm1, %v189_v11, %v190_v10  ;;  %v74_v23 = vand.u32 15, %v48_v17  ;;  %s840_s0 = smov 4   ;;  %s842_s18 = smov 12  }
   0x8   :  { %v201_v24 = vsel %vm200_vm0, %v198_v13, %v199_v14  ;;  %v47_v25 = vadd.s32 16, %v886_v7  ;;  %v193_v26 = vsel %vm191_vm1, %v188_v9, %v189_v11  ;;  %v195_v27 = vsel %vm191_vm1, %v190_v10, %v187_v12  ;;  %s843_s19 = smov 16   ;;  %s844_s4 = smov 32  }
   0x9   :  { %vm110_vm2 = vcmp.eq.s32.totalorder %v60_v21, 15  ;;  %vm112_vm3 = vcmp.eq.s32.totalorder %v74_v23, 15  ;;  %v841_v28 = vmov 0.0   ;;  %v215_v30 = vadd.f32 %v207_v16, %v192_v22  ;;  %v12_v16 = vld [vmem:[%s1197_s1] sm:$0xff]  ;;  %s845_s5 = smov 48   ;;  %s846_s6 = smov 64  }
   0xa   :  { %275 = vrot.lane.b32.xlu0 %v904_v20, %s840_s0  ;;  %v766_v29 = vsel %vm110_vm2, 1.0, %v841_v28  ;;  %v767_v31 = vsel %vm112_vm3, 1.0, %v841_v28  ;;  %v924_v32 = vadd.f32 %v220_v19, %v201_v24  ;;  %v67_v37 = vand.u32 15, %v47_v25  ;;  %s847_s30 = smov [#allocation3]   ;;  %s755_s8 = sshll.u32 %s1198_s2, 4  ;;  %s756_s8 = int_to_ptr.hbm [resolvable:$true] %s755_s8 }
   0xb   :  { %v180_v33 = vsub.f32 1.0, %v766_v29  ;;  %v206_v34 = vmul.f32 %v766_v29, %v866_v0  ;;  %v182_v35 = vsub.f32 1.0, %v767_v31  ;;  %v208_v36 = vmul.f32 %v767_v31, %v883_v6  ;;  %s753_s3 = sshll.u32 %s847_s30, 4  ;;  %s754_s3 = int_to_ptr.vmem [resolvable:$true] %s753_s3 }
   0xc   :  { %279 = vrot.lane.b32.xlu2 %v924_v32, %s840_s0  ;;  %vm99_vm4 = vcmp.eq.s32.totalorder %v67_v37, 0  ;;  %v202_v40 = vsel %vm200_vm0, %v197_v5, %v198_v13  ;;  %v235_v42 = vrot.slane %v215_v30, 1  ;;  %v231_v47 = vmul.f32 0.0, %v215_v30 }
   0xd   :  { %v210_v38 = vmul.f32 %v193_v26, %v180_v33  ;;  %v212_v39 = vmul.f32 %v195_v27, %v182_v35  ;;  %v933_v44 = vsel %vm99_vm4, 1.0, %v841_v28  ;;  %v53_v52 = vand.u32 15, %v886_v7 }
   0xe   :  { %v185_v45 = vsub.f32 1.0, %v933_v44  ;;  %v219_v46 = vmul.f32 %v933_v44, %v177_v3  ;;  %v205_v56 = vmul.f32 0.0, %v871_v2  ;;  %v194_v57 = vsel %vm191_vm1, %v187_v12, %v188_v9 }
   0xf   :  { %v214_v41 = vadd.f32 %v210_v38, %v206_v34  ;;  %v216_v43 = vadd.f32 %v212_v39, %v208_v36  ;;  %vm97_vm5 = vcmp.eq.s32.totalorder %v53_v52, 0  ;;  %v204_v0 = vsel %vm200_vm0, %v199_v14, %v196_v4  ;;  %v13_v14 = vld [vmem:[%s1197_s1 + $0x8] sm:$0xff] }
  0x10   :  { %v223_v50 = vmul.f32 %v202_v40, %v185_v45  ;;  %v959_v60 = vsel %vm97_vm5, 1.0, %v841_v28  ;;  %v213_v61 = vadd.f32 %v205_v56, %v194_v57  ;;  %vm367_vm6 = vcmask 1043456  }
  0x11   :  { %307 = vrot.lane.b32.xlu1 %v214_v41, %s842_s18  ;;  %v236_v48 = vrot.slane %v216_v43, 1  ;;  %v234_v49 = vrot.slane %v214_v41, 1  ;;  %v230_v58 = vmul.f32 %v766_v29, %v214_v41  ;;  %v183_v63 = vsub.f32 1.0, %v959_v60 }
  0x12   :  { %309 = vrot.lane.b32.xlu0 %v215_v30, %s842_s18  ;;  %v944_v53 = vadd.f32 %v223_v50, %v219_v46  ;;  %v233_v1 = vrot.slane %v213_v61, 1  ;;  %v217_v3 = vmul.f32 %v959_v60, %v871_v2  ;;  %v229_v8 = vmul.f32 0.0, %v213_v61 }
  0x13   :  { %v237_v51 = vsel %vm191_vm1, %v235_v42, %v236_v48  ;;  %v238_v55 = vsel %vm191_vm1, %v234_v49, %v235_v42  ;;  %v221_v5 = vmul.f32 %v204_v0, %v183_v63  ;;  %v232_v11 = vmul.f32 %v767_v31, %v216_v43 }
  0x14   :  { %v247_v54 = vadd.f32 %v237_v51, %v231_v47  ;;  %277 = vrot.lane.b32.xlu2 %v944_v53, %s840_s0  ;;  %v242_v59 = vmul.f32 %v238_v55, %v180_v33  ;;  %v240_v10 = vsel %vm191_vm1, %v236_v48, %v233_v1  ;;  %v254_v23 = vrot.slane %v904_v20, 7 }
  0x15   :  { %v225_v9 = vadd.f32 %v221_v5, %v217_v3  ;;  %v244_v12 = vmul.f32 %v240_v10, %v182_v35  ;;  %v255_v26 = vrot.slane %v944_v53, 7  ;;  %v250_v27 = vmul.f32 0.0, %v904_v20 }
  0x16   :  { %v246_v62 = vadd.f32 %v242_v59, %v230_v58  ;;  %vm333_vm7 = vcmask 31744   ;;  %v251_v36 = vmul.f32 %v933_v44, %v944_v53  ;;  %v256_v38 = vrot.slane %v924_v32, 7 }
  0x17   :  { %v248_v13 = vadd.f32 %v244_v12, %v232_v11  ;;  %v253_v24 = vrot.slane %v225_v9, 7  ;;  %v258_v30 = vsel %vm200_vm0, %v254_v23, %v255_v26  ;;  %vm338_vm8 = vcmask 64512  }
  0x18   :  { %v263_v37 = vmul.f32 %v258_v30, %v185_v45  ;;  %vm343_vm9 = vcmask 97280   ;;  %vm354_vm10 = vcmask 162816   ;;  %vm348_vm11 = vcmask 130048  }
  0x19   :  { %325 = vrot.lane.b32.xlu1 %v247_v54, %s843_s19  ;;  %v259_v29 = vsel %vm200_vm0, %v253_v24, %v254_v23  ;;  %v260_v40 = vsel %vm200_vm0, %v256_v38, %v253_v24  ;;  %v249_v47 = vmul.f32 %v959_v60, %v225_v9  ;;  %v257_v51 = vsel %vm200_vm0, %v255_v26, %v256_v38 }
  0x1a   :  { %295 = vrot.lane.b32.xlu0 %v883_v6, %s839_s15  ;;  %v239_v6 = vsel %vm191_vm1, %v233_v1, %v234_v49  ;;  %v266_v31 = vadd.f32 %v259_v29, %v250_v27  ;;  %v267_v39 = vadd.f32 %v263_v37, %v251_v36  ;;  %v261_v48 = vmul.f32 %v260_v40, %v183_v63 }
  0x1b   :  { %v245_v4 = vadd.f32 %v239_v6, %v229_v8  ;;  %v252_v49 = vmul.f32 0.0, %v924_v32  ;;  %v804_v6 = vld [vmem:[%s1197_s1 + $0xb8] ss:$0 sm:$0xff]  ;;  %vm560_vm5 = vcmask 523264  }
  0x1c   :  { %311 = vrot.lane.b32.xlu2 %v216_v43, %s842_s18  ;;  %v265_v53 = vadd.f32 %v261_v48, %v249_v47 }
  0x1d   :  { %v268_v54 = vadd.f32 %v257_v51, %v252_v49 }
  0x21   :  { %323 = vrot.lane.b32.xlu1 %v246_v62, %s843_s19 }
  0x22   :  { %289 = vrot.lane.b32.xlu0 %v871_v2, %s839_s15  ;;  %v14_v2 = vld [vmem:[%s1197_s1 + $0x10] sm:$0xf] }
  0x23   :  { %782 = vmatpush.msk.msra.mxu3 %vm367_vm6, %v14_v2  ;;  %774 = vmatpush.msk.msra.mxu0 %vm367_vm6, %v14_v2  ;;  %vm564_vm6 = vcmask 654336  }
  0x24   :  { %305 = vrot.lane.b32.xlu2 %v213_v61, %s842_s18 }
  0x25   :  { %783 = vmatpush.msra.mxu3 %v13_v14  ;;  %385 = vmatpush.msra.mxu0 %v13_v14 }
  0x27   :  { %784 = vmatpush.msra.mxu3 %v12_v16  ;;  %386 = vmatpush.msra.mxu0 %v12_v16 }
  0x29   :  { %273 = vrot.lane.b32.xlu1 %v225_v9, %s840_s0 }
  0x2a   :  { %321 = vrot.lane.b32.xlu0 %v245_v4, %s843_s19 }
  0x31   :  { %327 = vrot.lane.b32.xlu1 %v248_v13, %s843_s19 }
  0x5c   :  { %v294_v18 = vpop.permute.xlu2 %293 }
  0x66   :  { %v280_v21 = vpop.permute.xlu2 %279 }
  0x67   :  { %v337_v60 = vsel %vm333_vm7, %v268_v54, %v280_v21 }
  0x6e   :  { %v278_v33 = vpop.permute.xlu2 %277 }
  0x6f   :  { %v336_v50 = vsel %vm333_vm7, %v267_v39, %v278_v33 }
  0x70   :  { %v341_v52 = vsel %vm338_vm8, %v336_v50, %v294_v18 }
  0x74   :  { %v292_v17 = vpop.permute.xlu0 %291 }
  0x76   :  { %v312_v43 = vpop.permute.xlu2 %311 }
  0x7c   :  { %v276_v19 = vpop.permute.xlu0 %275 }
  0x7d   :  { %v335_v20 = vsel %vm333_vm7, %v266_v31, %v276_v19 }
  0x7e   :  { %v340_v41 = vsel %vm338_vm8, %v335_v20, %v292_v17  ;;  %v306_v57 = vpop.permute.xlu2 %305 }
  0x83   :  { %v308_v22 = vpop.permute.xlu1 %307 }
  0x84   :  { %v310_v25 = vpop.permute.xlu0 %309  ;;  %v345_v42 = vsel %vm343_vm9, %v340_v41, %v308_v22 }
  0x85   :  { %v346_v55 = vsel %vm343_vm9, %v341_v52, %v310_v25 }
  0x8b   :  { %v326_v34 = vpop.permute.xlu1 %325 }
  0x8c   :  { %v296_v35 = vpop.permute.xlu0 %295  ;;  %v351_v59 = vsel %vm348_vm11, %v346_v55, %v326_v34 }
  0x8d   :  { %v342_v0 = vsel %vm338_vm8, %v337_v60, %v296_v35 }
  0x8e   :  { %v347_v1 = vsel %vm343_vm9, %v342_v0, %v312_v43 }
  0x93   :  { %v324_v46 = vpop.permute.xlu1 %323 }
  0x94   :  { %v350_v44 = vsel %vm348_vm11, %v345_v42, %v324_v46  ;;  %v290_v45 = vpop.permute.xlu0 %289 }
  0x95   :  { %776 = vmatmul.msk.f32.vlgmr.msra.gmra.mxu3 %vm354_vm10, %v350_v44 }
  0x9b   :  { %v274_v56 = vpop.permute.xlu1 %273 }
  0x9c   :  { %v334_v58 = vsel %vm333_vm7, %v265_v53, %v274_v56  ;;  %v322_v32 = vpop.permute.xlu0 %321 }
  0x9d   :  { %v339_v61 = vsel %vm338_vm8, %v334_v58, %v290_v45  ;;  %777 = vmatmul.msk.f32.gmra.mxu3 %vm354_vm10, %v351_v59 }
  0x9e   :  { %v344_v62 = vsel %vm343_vm9, %v339_v61, %v306_v57  ;;  %v36_v61 = vld [vmem:[%s1197_s1 + $0xb9] sm:$0x1] }
  0x9f   :  { %v349_v63 = vsel %vm348_vm11, %v344_v62, %v322_v32 }
  0xa0   :  { %775 = vmatmul.msk.f32.vlgmr.msra.gmra.mxu0 %vm354_vm10, %v349_v63 }
  0xa3   :  { %v328_v3 = vpop.permute.xlu1 %327 }
  0xa4   :  { %v352_v5 = vsel %vm348_vm11, %v347_v1, %v328_v3  ;;  %v37_v1 = vld [vmem:[%s1197_s1 + $0xba] sm:$0x1] }
  0xa5   :  { %778 = vmatmul.msk.f32.gmra.mxu3 %vm354_vm10, %v352_v5 }
 0x118   :  { %v391_v8 = vpop.f32.mrf.mxu3 }
 0x119   :  { %v392_v9 = vadd.f32 %v804_v6, %v391_v8 }
 0x11b   :  { %v401_v13 = vmax.f32 %v392_v9, 0.0 }
 0x11d   :  { %v388_v4 = vpop.f32.mrf.mxu0  ;;  %v419_v17 = vmul.f32 %v401_v13, %v401_v13  ;;  %v405_v19 = vsel %vm348_vm11, %v401_v13, 0.0 }
 0x11e   :  { %v389_v10 = vadd.f32 %v804_v6, %v388_v4 }
 0x11f   :  { %v423_v25 = vsel %vm348_vm11, %v419_v17, 0.0 }
 0x120   :  { %v400_v11 = vmax.f32 %v389_v10, 0.0  ;;  %v394_v12 = vpop.f32.mrf.mxu3 }
 0x121   :  { %v395_v2 = vadd.f32 %v804_v6, %v394_v12 }
 0x122   :  { %v418_v14 = vmul.f32 %v400_v11, %v400_v11  ;;  %v404_v18 = vsel %vm348_vm11, %v400_v11, 0.0 }
 0x123   :  { %v402_v16 = vmax.f32 %v395_v2, 0.0  ;;  %v406_v23 = vadd.f32 %v405_v19, %v404_v18  ;;  %v132_v19 = vand.u32 7, %v895_v15 }
 0x124   :  { %v422_v21 = vsel %vm348_vm11, %v418_v14, 0.0 }
 0x125   :  { %v420_v22 = vmul.f32 %v402_v16, %v402_v16  ;;  %v407_v26 = vsel %vm348_vm11, %v402_v16, 0.0  ;;  %v424_v29 = vadd.f32 %v423_v25, %v422_v21  ;;  %v125_v21 = vand.u32 7, %v886_v7 }
 0x126   :  { %v408_v33 = vadd.f32 %v407_v26, %v406_v23  ;;  %vm146_vm15 = vcmp.eq.s32.totalorder %v132_v19, 0  ;;  %vm152_vm3 = vcmp.eq.s32.totalorder %v132_v19, 7  ;;  %v18_v19 = vld [vmem:[%s1197_s1 + $0x30] sm:$0xff] }
 0x127   :  { %v425_v30 = vsel %vm348_vm11, %v420_v22, 0.0  ;;  %vm145_vm2 = vcmp.eq.s32.totalorder %v125_v21, 0  ;;  %vm151_vm4 = vcmp.eq.s32.totalorder %v125_v21, 7  ;;  %v17_v21 = vld [vmem:[%s1197_s1 + $0x28] sm:$0xff] }
 0x128   :  { %v397_v24 = vpop.f32.mrf.mxu3  ;;  %v426_v36 = vadd.f32 %v425_v30, %v424_v29  ;;  %v768_v23 = vsel %vm145_vm2, 1.0, %v841_v28  ;;  %v770_v15 = vsel %vm151_vm4, 1.0, %v841_v28 }
 0x129   :  { %v398_v27 = vadd.f32 %v804_v6, %v397_v24  ;;  %v771_v24 = vsel %vm152_vm3, 1.0, %v841_v28 }
 0x12b   :  { %v403_v31 = vmax.f32 %v398_v27, 0.0 }
 0x12d   :  { %v409_v34 = vsel %vm348_vm11, %v403_v31, 0.0  ;;  %v421_v35 = vmul.f32 %v403_v31, %v403_v31 }
 0x12e   :  { %v410_v37 = vadd.f32 %v409_v34, %v408_v33  ;;  %v478_v33 = vsub.f32 1.0, %v768_v23  ;;  %v477_v34 = vsub.f32 1.0, %v771_v24 }
 0x12f   :  { %v427_v38 = vsel %vm348_vm11, %v421_v35, 0.0  ;;  %v476_v35 = vsub.f32 1.0, %v770_v15 }
 0x130   :  { %v411_v20 = vrot.slane %v410_v37, 4  ;;  %v428_v39 = vadd.f32 %v427_v38, %v426_v36 }
 0x132   :  { %v412_v40 = vadd.f32 %v411_v20, %v410_v37  ;;  %v429_v41 = vrot.slane %v428_v39, 4 }
 0x134   :  { %v413_v42 = vrot.slane %v412_v40, 2  ;;  %v430_v43 = vadd.f32 %v429_v41, %v428_v39 }
 0x136   :  { %v414_v46 = vadd.f32 %v413_v42, %v412_v40  ;;  %v431_v44 = vrot.slane %v430_v43, 2 }
 0x138   :  { %v415_v45 = vrot.slane %v414_v46, 1  ;;  %v432_v47 = vadd.f32 %v431_v44, %v430_v43 }
 0x13a   :  { %v416_v48 = vadd.f32 %v415_v45, %v414_v46  ;;  %v433_v49 = vrot.slane %v432_v47, 1 }
 0x13c   :  { %v417_v50 = vmul.f32 0.03125, %v416_v48  ;;  %v434_v51 = vadd.f32 %v433_v49, %v432_v47 }
 0x13e   :  { %v435_v52 = vmul.f32 0.03125, %v434_v51  ;;  %v436_v53 = vmul.f32 %v417_v50, %v417_v50 }
 0x140   :  { %v437_v54 = vsub.f32 %v435_v52, %v436_v53 }
 0x142   :  { %v438_v55 = vmax.f32 %v437_v54, 0.0 }
 0x144   :  { %v439_v56 = vadd.f32 1e-05, %v438_v55 }
 0x146   :  { %807 = vrsqrt.f32 %v439_v56  ;;  %vm446_vm13 = vweird.f32 %v439_v56 }
 0x14c   :  { %v808_v57 = vpop.eup %807 }
 0x14d   :  { %v441_v58 = vmul.f32 %v808_v57, %v439_v56  ;;  %vm447_vm12 = vweird.f32 %v808_v57 }
 0x14e   :  { %vm448_vm14 = vmor %vm446_vm13, %vm447_vm12 }
 0x14f   :  { %v442_v59 = vmul.f32 %v808_v57, %v441_v58 }
 0x151   :  { %v443_v32 = vmul.f32 0.5, %v442_v59 }
 0x153   :  { %v444_v60 = vsub.f32 1.5, %v443_v32 }
 0x155   :  { %v445_v62 = vmul.f32 %v808_v57, %v444_v60 }
 0x157   :  { %v449_v63 = vsel %vm448_vm14, %v808_v57, %v445_v62 }
 0x158   :  { %v450_v0 = vmul.f32 %v449_v63, %v36_v61 }
 0x15a   :  { %v451_v3 = vmul.f32 %v450_v0, %v417_v50  ;;  %v453_v5 = vperm.slane %v450_v0, 0 }
 0x15c   :  { %v452_v8 = vsub.f32 %v37_v1, %v451_v3  ;;  %v454_v6 = vmul.f32 %v453_v5, %v400_v11  ;;  %v455_v9 = vmul.f32 %v453_v5, %v401_v13  ;;  %v456_v4 = vmul.f32 %v453_v5, %v402_v16 }
 0x15d   :  { %v457_v12 = vmul.f32 %v453_v5, %v403_v31  ;;  %v769_v16 = vsel %vm146_vm15, 1.0, %v841_v28 }
 0x15e   :  { %v458_v10 = vperm.slane %v452_v8, 0  ;;  %v479_v31 = vsub.f32 1.0, %v769_v16 }
 0x160   :  { %v459_v2 = vadd.f32 %v458_v10, %v454_v6  ;;  %v460_v14 = vadd.f32 %v458_v10, %v455_v9  ;;  %v461_v17 = vadd.f32 %v458_v10, %v456_v4  ;;  %v462_v18 = vadd.f32 %v458_v10, %v457_v12  ;;  %v24_v10 = vld [vmem:[%s1197_s1 + $0x60] sm:$0xff]  ;;  %v23_v12 = vld [vmem:[%s1197_s1 + $0x58] sm:$0xff] }
 0x161   :  { %785 = vmatpush.msra.mxu1 %v24_v10  ;;  %577 = vmatpush.msrb.mxu0 %v24_v10 }
 0x162   :  { %463 = vst.msk [vmem:[#allocation2] sm:$0xff] %vm348_vm11, %v459_v2  ;;  %v22_v2 = vld [vmem:[%s1197_s1 + $0x50] sm:$0xff] }
 0x163   :  { %464 = vst.msk [vmem:[#allocation2 + $0x8] sm:$0xff] %vm348_vm11, %v460_v14  ;;  %786 = vmatpush.msra.mxu1 %v23_v12  ;;  %578 = vmatpush.msrb.mxu0 %v23_v12  ;;  %v21_v14 = vld [vmem:[%s1197_s1 + $0x48] sm:$0xff] }
 0x164   :  { %465 = vst.msk [vmem:[#allocation2 + $0x10] sm:$0xff] %vm348_vm11, %v461_v17  ;;  %v20_v17 = vld [vmem:[%s1197_s1 + $0x40] sm:$0xff] }
 0x165   :  { %466 = vst.msk [vmem:[#allocation2 + $0x18] sm:$0xff] %vm348_vm11, %v462_v18  ;;  %787 = vmatpush.msra.mxu1 %v22_v2  ;;  %579 = vmatpush.msrb.mxu0 %v22_v2  ;;  %v19_v18 = vld [vmem:[%s1197_s1 + $0x38] sm:$0xff] }
 0x166   :  { %v39_v2 = vld [vmem:[%s1197_s1 + $0xbc] sm:$0x1] }
 0x167   :  { %788 = vmatpush.msra.mxu1 %v21_v14  ;;  %580 = vmatpush.msrb.mxu0 %v21_v14 }
 0x169   :  { %789 = vmatpush.msra.mxu1 %v20_v17  ;;  %581 = vmatpush.msrb.mxu0 %v20_v17 }
 0x16a   :  { %v467_v11 = vld [vmem:[#allocation2] ss:$2 sm:$0xff]  ;;  %v471_v13 = vld [vmem:[#allocation2 + $0x1] ss:$2 sm:$0xff] }
 0x16b   :  { %v474_v22 = vmax.f32 %v467_v11, %v471_v13  ;;  %790 = vmatpush.msra.mxu1 %v19_v18  ;;  %582 = vmatpush.msrb.mxu0 %v19_v18  ;;  %v16_v11 = vld [vmem:[%s1197_s1 + $0x20] sm:$0xff]  ;;  %v15_v13 = vld [vmem:[%s1197_s1 + $0x18] sm:$0xff] }
 0x16c   :  { %v469_v25 = vld [vmem:[#allocation2 + $0x10] ss:$2 sm:$0xff]  ;;  %v473_v26 = vld [vmem:[#allocation2 + $0x11] ss:$2 sm:$0xff] }
 0x16d   :  { %v475_v27 = vmax.f32 %v469_v25, %v473_v26  ;;  %530 = vrot.lane.b32.xlu0 %v474_v22, %s844_s4  ;;  %v484_v29 = vrot.slane %v474_v22, 7  ;;  %v480_v30 = vrot.slane %v474_v22, 1  ;;  %v494_v20 = vmul.f32 %v768_v23, %v474_v22  ;;  %791 = vmatpush.msra.mxu1 %v18_v19 }
 0x16e   :  { %v488_v40 = vmul.f32 %v770_v15, %v474_v22  ;;  %583 = vmatpush.msrb.mxu0 %v18_v19  ;;  %v40_v19 = vld [vmem:[%s1197_s1 + $0xbd] sm:$0x1] }
 0x16f   :  { %532 = vrot.lane.b32.xlu1 %v475_v27, %s844_s4  ;;  %v485_v36 = vrot.slane %v475_v27, 7  ;;  %v481_v37 = vrot.slane %v475_v27, 1  ;;  %v495_v38 = vmul.f32 %v769_v16, %v475_v27  ;;  %v489_v39 = vmul.f32 %v771_v24, %v475_v27  ;;  %792 = vmatpush.msra.mxu1 %v17_v21 }
 0x170   :  { %584 = vmatpush.msrb.mxu0 %v17_v21 }
 0x171   :  { %v486_v41 = vsel %vm200_vm0, %v484_v29, %v485_v36  ;;  %v487_v42 = vsel %vm200_vm0, %v485_v36, %v484_v29  ;;  %v483_v43 = vsel %vm191_vm1, %v481_v37, %v480_v30  ;;  %v482_v46 = vsel %vm191_vm1, %v480_v30, %v481_v37  ;;  %793 = vmatpush.msra.mxu1 %v16_v11 }
 0x172   :  { %v497_v44 = vmul.f32 %v486_v41, %v479_v31  ;;  %v496_v45 = vmul.f32 %v487_v42, %v478_v33  ;;  %v491_v47 = vmul.f32 %v483_v43, %v477_v34  ;;  %v490_v48 = vmul.f32 %v482_v46, %v476_v35  ;;  %585 = vmatpush.msrb.mxu0 %v16_v11 }
 0x173   :  { %794 = vmatpush.msra.mxu1 %v15_v13 }
 0x174   :  { %v499_v49 = vadd.f32 %v497_v44, %v495_v38  ;;  %v498_v50 = vadd.f32 %v496_v45, %v494_v20  ;;  %v493_v51 = vadd.f32 %v491_v47, %v489_v39  ;;  %v492_v52 = vadd.f32 %v490_v48, %v488_v40  ;;  %586 = vmatpush.msrb.mxu0 %v15_v13  ;;  %v805_v38 = vld [vmem:[%s1197_s1 + $0xbb] ss:$0 sm:$0xff] }
 0x176   :  { %524 = vrot.lane.b32.xlu2 %v499_v49, %s843_s19  ;;  %v513_v53 = vrot.slane %v499_v49, 7  ;;  %v512_v54 = vrot.slane %v498_v50, 7  ;;  %540 = vrot.lane.b32.xlu0 %v493_v51, %s845_s5  ;;  %v503_v55 = vrot.slane %v493_v51, 1  ;;  %v502_v56 = vrot.slane %v492_v52, 1 }
 0x177   :  { %522 = vrot.lane.b32.xlu1 %v498_v50, %s843_s19  ;;  %v511_v57 = vmul.f32 %v769_v16, %v499_v49  ;;  %v510_v58 = vmul.f32 %v768_v23, %v498_v50  ;;  %v500_v0 = vmul.f32 %v770_v15, %v492_v52  ;;  %v501_v9 = vmul.f32 %v771_v24, %v493_v51 }
 0x178   :  { %v504_v59 = vsel %vm191_vm1, %v502_v56, %v503_v55  ;;  %v514_v32 = vsel %vm200_vm0, %v512_v54, %v513_v53  ;;  %v515_v60 = vsel %vm200_vm0, %v513_v53, %v512_v54  ;;  %v505_v8 = vsel %vm191_vm1, %v503_v55, %v502_v56 }
 0x179   :  { %v506_v61 = vmul.f32 %v504_v59, %v476_v35  ;;  %v517_v62 = vmul.f32 %v514_v32, %v479_v31  ;;  %v516_v63 = vmul.f32 %v515_v60, %v478_v33  ;;  %v507_v6 = vmul.f32 %v505_v8, %v477_v34 }
 0x17a   :  { %vm554_vm0 = vcmask 261120   ;;  %vm557_vm1 = vcmask 392192  }
 0x17b   :  { %v519_v1 = vadd.f32 %v517_v62, %v511_v57  ;;  %v518_v3 = vadd.f32 %v516_v63, %v510_v58  ;;  %v508_v5 = vadd.f32 %v506_v61, %v500_v0  ;;  %v509_v4 = vadd.f32 %v507_v6, %v501_v9 }
 0x17e   :  { %538 = vrot.lane.b32.xlu2 %v492_v52, %s845_s5 }
 0x17f   :  { %546 = vrot.lane.b32.xlu1 %v508_v5, %s846_s6 }
 0x186   :  { %548 = vrot.lane.b32.xlu2 %v509_v4, %s846_s6 }
 0x1d0   :  { %v525_v16 = vpop.permute.xlu2 %524 }
 0x1d1   :  { %v553_v15 = vsel %vm348_vm11, %v519_v1, %v525_v16 }
 0x1d8   :  { %v539_v22 = vpop.permute.xlu2 %538 }
 0x1df   :  { %v531_v23 = vpop.permute.xlu0 %530 }
 0x1e0   :  { %v549_v27 = vpop.permute.xlu2 %548 }
 0x1e1   :  { %v533_v24 = vpop.permute.xlu1 %532 }
 0x1e2   :  { %v556_v25 = vsel %vm554_vm0, %v553_v15, %v533_v24 }
 0x1e8   :  { %v541_v26 = vpop.permute.xlu0 %540 }
 0x1e9   :  { %v523_v29 = vpop.permute.xlu1 %522  ;;  %v559_v30 = vsel %vm557_vm1, %v556_v25, %v541_v26  ;;  %v161_v25 = vand.u32 3, %v886_v7 }
 0x1ea   :  { %v562_v31 = vsel %vm560_vm5, %v559_v30, %v549_v27  ;;  %v552_v33 = vsel %vm348_vm11, %v518_v3, %v523_v29 }
 0x1eb   :  { %780 = vmatmul.msk.f32.vlgmr.msra.gmra.mxu1 %vm564_vm6, %v562_v31  ;;  %v555_v34 = vsel %vm554_vm0, %v552_v33, %v531_v23  ;;  %vm169_vm10 = vcmp.eq.s32.totalorder %v161_v25, 0  ;;  %vm172_vm12 = vcmp.eq.s32.totalorder %v161_v25, 3 }
 0x1ec   :  { %v558_v35 = vsel %vm557_vm1, %v555_v34, %v539_v22  ;;  %v772_v26 = vsel %vm169_vm10, 1.0, %v841_v28  ;;  %v773_v27 = vsel %vm172_vm12, 1.0, %v841_v28 }
 0x1ed   :  { %v647_v33 = vsub.f32 1.0, %v772_v26  ;;  %v646_v34 = vsub.f32 1.0, %v773_v27 }
 0x1f1   :  { %v547_v36 = vpop.permute.xlu1 %546 }
 0x1f2   :  { %v561_v37 = vsel %vm560_vm5, %v558_v35, %v547_v36 }
 0x1f3   :  { %779 = vmatmul.msk.f32.vlgmr.msrb.gmra.mxu0 %vm564_vm6, %v561_v37 }
 0x268   :  { %v591_v20 = vpop.f32.mrf.mxu1 }
 0x269   :  { %v592_v39 = vadd.f32 %v805_v38, %v591_v20 }
 0x26b   :  { %v595_v40 = vmax.f32 %v592_v39, 0.0 }
 0x26d   :  { %v607_v43 = vmul.f32 %v595_v40, %v595_v40  ;;  %v597_v44 = vsel %vm348_vm11, %v595_v40, 0.0 }
 0x26f   :  { %v609_v49 = vsel %vm348_vm11, %v607_v43, 0.0 }
 0x270   :  { %v588_v41 = vpop.f32.mrf.mxu0 }
 0x271   :  { %v589_v42 = vadd.f32 %v805_v38, %v588_v41 }
 0x273   :  { %v594_v46 = vmax.f32 %v589_v42, 0.0 }
 0x275   :  { %v596_v45 = vsel %vm348_vm11, %v594_v46, 0.0  ;;  %v606_v47 = vmul.f32 %v594_v46, %v594_v46 }
 0x276   :  { %v598_v48 = vadd.f32 %v597_v44, %v596_v45 }
 0x277   :  { %v608_v50 = vsel %vm348_vm11, %v606_v47, 0.0 }
 0x278   :  { %v599_v51 = vrot.slane %v598_v48, 4  ;;  %v610_v52 = vadd.f32 %v609_v49, %v608_v50  ;;  %v33_v49 = vld [vmem:[%s1197_s1 + $0xa8] sm:$0xff]  ;;  %v32_v50 = vld [vmem:[%s1197_s1 + $0xa0] sm:$0xff] }
 0x27a   :  { %v600_v53 = vadd.f32 %v599_v51, %v598_v48  ;;  %v611_v54 = vrot.slane %v610_v52, 4  ;;  %v34_v48 = vld [vmem:[%s1197_s1 + $0xb0] sm:$0xff]  ;;  %v31_v51 = vld [vmem:[%s1197_s1 + $0x98] sm:$0xff] }
 0x27b   :  { %694 = vmatpush.msra.mxu2 %v34_v48 }
 0x27c   :  { %v601_v55 = vrot.slane %v600_v53, 2  ;;  %v612_v56 = vadd.f32 %v611_v54, %v610_v52  ;;  %v30_v52 = vld [vmem:[%s1197_s1 + $0x90] sm:$0xff]  ;;  %v28_v54 = vld [vmem:[%s1197_s1 + $0x80] sm:$0xff] }
 0x27d   :  { %695 = vmatpush.msra.mxu2 %v33_v49 }
 0x27e   :  { %v602_v57 = vadd.f32 %v601_v55, %v600_v53  ;;  %v613_v58 = vrot.slane %v612_v56, 2  ;;  %v29_v53 = vld [vmem:[%s1197_s1 + $0x88] sm:$0xff]  ;;  %v27_v55 = vld [vmem:[%s1197_s1 + $0x78] sm:$0xff] }
 0x27f   :  { %696 = vmatpush.msra.mxu2 %v32_v50 }
 0x280   :  { %v603_v59 = vrot.slane %v602_v57, 1  ;;  %v614_v32 = vadd.f32 %v613_v58, %v612_v56  ;;  %v26_v56 = vld [vmem:[%s1197_s1 + $0x70] sm:$0xff] }
 0x281   :  { %697 = vmatpush.msra.mxu2 %v31_v51 }
 0x282   :  { %v604_v60 = vadd.f32 %v603_v59, %v602_v57  ;;  %v615_v61 = vrot.slane %v614_v32, 1  ;;  %v25_v57 = vld [vmem:[%s1197_s1 + $0x68] sm:$0xff] }
 0x283   :  { %698 = vmatpush.msra.mxu2 %v30_v52 }
 0x284   :  { %v605_v62 = vmul.f32 0.0625, %v604_v60  ;;  %v616_v63 = vadd.f32 %v615_v61, %v614_v32 }
 0x285   :  { %699 = vmatpush.msra.mxu2 %v29_v53 }
 0x286   :  { %v617_v0 = vmul.f32 0.0625, %v616_v63  ;;  %v618_v1 = vmul.f32 %v605_v62, %v605_v62 }
 0x287   :  { %700 = vmatpush.msra.mxu2 %v28_v54 }
 0x288   :  { %v619_v3 = vsub.f32 %v617_v0, %v618_v1  ;;  %v806_v1 = vld [vmem:[%s1197_s1 + $0xbe] ss:$0 sm:$0xff] }
 0x289   :  { %701 = vmatpush.msra.mxu2 %v27_v55 }
 0x28a   :  { %v620_v5 = vmax.f32 %v619_v3, 0.0 }
 0x28b   :  { %702 = vmatpush.msra.mxu2 %v26_v56 }
 0x28c   :  { %v621_v8 = vadd.f32 1e-05, %v620_v5 }
 0x28d   :  { %703 = vmatpush.msra.mxu2 %v25_v57 }
 0x28e   :  { %809 = vrsqrt.f32 %v621_v8  ;;  %vm628_vm8 = vweird.f32 %v621_v8 }
 0x294   :  { %v810_v6 = vpop.eup %809 }
 0x295   :  { %v623_v9 = vmul.f32 %v810_v6, %v621_v8  ;;  %vm629_vm7 = vweird.f32 %v810_v6 }
 0x296   :  { %vm630_vm9 = vmor %vm628_vm8, %vm629_vm7 }
 0x297   :  { %v624_v4 = vmul.f32 %v810_v6, %v623_v9 }
 0x299   :  { %v625_v10 = vmul.f32 0.5, %v624_v4 }
 0x29b   :  { %v626_v12 = vsub.f32 1.5, %v625_v10 }
 0x29d   :  { %v627_v14 = vmul.f32 %v810_v6, %v626_v12 }
 0x29f   :  { %v631_v17 = vsel %vm630_vm9, %v810_v6, %v627_v14 }
 0x2a0   :  { %v632_v18 = vmul.f32 %v631_v17, %v39_v2 }
 0x2a2   :  { %v633_v21 = vmul.f32 %v632_v18, %v605_v62  ;;  %v635_v11 = vperm.slane %v632_v18, 0 }
 0x2a4   :  { %v634_v13 = vsub.f32 %v40_v19, %v633_v21  ;;  %v636_v16 = vmul.f32 %v635_v11, %v594_v46  ;;  %v637_v22 = vmul.f32 %v635_v11, %v595_v40 }
 0x2a6   :  { %v638_v23 = vperm.slane %v634_v13, 0 }
 0x2a8   :  { %v639_v24 = vadd.f32 %v638_v23, %v636_v16  ;;  %v640_v15 = vadd.f32 %v638_v23, %v637_v22 }
 0x2aa   :  { %641 = vst.msk [vmem:[#allocation2] sm:$0xff] %vm348_vm11, %v639_v24 }
 0x2ab   :  { %642 = vst.msk [vmem:[#allocation2 + $0x8] sm:$0xff] %vm348_vm11, %v640_v15 }
 0x2b2   :  { %v643_v29 = vld [vmem:[#allocation2] ss:$2 sm:$0xff]  ;;  %v644_v30 = vld [vmem:[#allocation2 + $0x1] ss:$2 sm:$0xff] }
 0x2b3   :  { %v645_v31 = vmax.f32 %v643_v29, %v644_v30 }
 0x2b5   :  { %669 = vrot.lane.b32.xlu1 %v645_v31, %s844_s4  ;;  %v649_v35 = vrot.slane %v645_v31, 7  ;;  %v648_v36 = vrot.slane %v645_v31, 1  ;;  %v653_v7 = vmul.f32 %v772_v26, %v645_v31  ;;  %v650_v38 = vmul.f32 %v773_v27, %v645_v31 }
 0x2b7   :  { %v654_v37 = vmul.f32 %v649_v35, %v647_v33  ;;  %v651_v20 = vmul.f32 %v648_v36, %v646_v34  ;;  %v42_v35 = vld [vmem:[%s1197_s1 + $0xbf] sm:$0x1] }
 0x2b9   :  { %v655_v39 = vadd.f32 %v654_v37, %v653_v7  ;;  %v652_v40 = vadd.f32 %v651_v20, %v650_v38  ;;  %v43_v38 = vld [vmem:[%s1197_s1 + $0xc0] sm:$0x1] }
 0x2bb   :  { %665 = vrot.lane.b32.xlu0 %v655_v39, %s843_s19  ;;  %v661_v41 = vrot.slane %v655_v39, 7  ;;  %673 = vrot.lane.b32.xlu2 %v652_v40, %s845_s5  ;;  %v657_v28 = vrot.slane %v652_v40, 1  ;;  %v660_v42 = vmul.f32 %v772_v26, %v655_v39  ;;  %v656_v44 = vmul.f32 %v773_v27, %v652_v40 }
 0x2bd   :  { %v658_v43 = vmul.f32 %v657_v28, %v646_v34  ;;  %v662_v46 = vmul.f32 %v661_v41, %v647_v33 }
 0x2bf   :  { %v663_v45 = vadd.f32 %v662_v46, %v660_v42  ;;  %v659_v47 = vadd.f32 %v658_v43, %v656_v44 }
 0x2c3   :  { %677 = vrot.lane.b32.xlu0 %v659_v47, %s846_s6 }
 0x315   :  { %v674_v61 = vpop.permute.xlu2 %673 }
 0x327   :  { %v670_v32 = vpop.permute.xlu1 %669 }
 0x32d   :  { %v666_v58 = vpop.permute.xlu0 %665 }
 0x32e   :  { %v680_v59 = vsel %vm348_vm11, %v663_v45, %v666_v58 }
 0x32f   :  { %v681_v60 = vsel %vm554_vm0, %v680_v59, %v670_v32 }
 0x330   :  { %v682_v63 = vsel %vm557_vm1, %v681_v60, %v674_v61 }
 0x335   :  { %v678_v62 = vpop.permute.xlu0 %677 }
 0x336   :  { %v683_v0 = vsel %vm560_vm5, %v682_v63, %v678_v62 }
 0x337   :  { %781 = vmatmul.msk.f32.vlgmr.msra.gmra.mxu2 %vm564_vm6, %v683_v0 }
 0x3ba   :  { %v705_v3 = vpop.f32.mrf.mxu2 }
 0x3bb   :  { %v706_v5 = vadd.f32 %v806_v1, %v705_v3 }
 0x3bd   :  { %v708_v8 = vmax.f32 %v706_v5, 0.0 }
 0x3bf   :  { %v709_v6 = vsel %vm348_vm11, %v708_v8, 0.0  ;;  %v717_v9 = vmul.f32 %v708_v8, %v708_v8 }
 0x3c0   :  { %v710_v4 = vrot.slane %v709_v6, 4 }
 0x3c1   :  { %v718_v10 = vsel %vm348_vm11, %v717_v9, 0.0 }
 0x3c2   :  { %v711_v12 = vadd.f32 %v710_v4, %v709_v6  ;;  %v719_v2 = vrot.slane %v718_v10, 4 }
 0x3c4   :  { %v712_v14 = vrot.slane %v711_v12, 2  ;;  %v720_v17 = vadd.f32 %v719_v2, %v718_v10 }
 0x3c6   :  { %v713_v18 = vadd.f32 %v712_v14, %v711_v12  ;;  %v721_v19 = vrot.slane %v720_v17, 2 }
 0x3c8   :  { %v714_v21 = vrot.slane %v713_v18, 1  ;;  %v722_v11 = vadd.f32 %v721_v19, %v720_v17 }
 0x3ca   :  { %v715_v13 = vadd.f32 %v714_v21, %v713_v18  ;;  %v723_v16 = vrot.slane %v722_v11, 1 }
 0x3cc   :  { %v716_v22 = vmul.f32 0.125, %v715_v13  ;;  %v724_v23 = vadd.f32 %v723_v16, %v722_v11 }
 0x3ce   :  { %v725_v24 = vmul.f32 0.125, %v724_v23  ;;  %v726_v15 = vmul.f32 %v716_v22, %v716_v22 }
 0x3d0   :  { %v727_v25 = vsub.f32 %v725_v24, %v726_v15 }
 0x3d2   :  { %v728_v26 = vmax.f32 %v727_v25, 0.0 }
 0x3d4   :  { %v729_v27 = vadd.f32 1e-05, %v728_v26 }
 0x3d6   :  { %811 = vrsqrt.f32 %v729_v27  ;;  %vm736_vm14 = vweird.f32 %v729_v27 }
 0x3dc   :  { %v812_v29 = vpop.eup %811 }
 0x3dd   :  { %v731_v30 = vmul.f32 %v812_v29, %v729_v27  ;;  %vm737_vm13 = vweird.f32 %v812_v29 }
 0x3de   :  { %vm738_vm15 = vmor %vm736_vm14, %vm737_vm13 }
 0x3df   :  { %v732_v31 = vmul.f32 %v812_v29, %v731_v30 }
 0x3e1   :  { %v733_v33 = vmul.f32 0.5, %v732_v31 }
 0x3e3   :  { %v734_v34 = vsub.f32 1.5, %v733_v33 }
 0x3e5   :  { %v735_v36 = vmul.f32 %v812_v29, %v734_v34 }
 0x3e7   :  { %v739_v7 = vsel %vm738_vm15, %v812_v29, %v735_v36 }
 0x3e8   :  { %v740_v37 = vmul.f32 %v739_v7, %v42_v35 }
 0x3ea   :  { %v743_v20 = vperm.slane %v740_v37, 0  ;;  %v741_v39 = vmul.f32 %v740_v37, %v716_v22 }
 0x3ec   :  { %v742_v40 = vsub.f32 %v43_v38, %v741_v39  ;;  %v744_v41 = vmul.f32 %v743_v20, %v708_v8 }
 0x3ee   :  { %v745_v28 = vperm.slane %v742_v40, 0 }
 0x3f0   :  { %v746_v42 = vadd.f32 %v745_v28, %v744_v41 }
 0x3f2   :  { %747 = vst.msk [vmem:[#allocation3] sm:$0xff] %vm348_vm11, %v746_v42 }
 0x3f3   :  { %758 = dma.vmem_to_hbm [thread:$0]  %s754_s3, 128, %s756_s8, [#allocation4]  }
 0x3f4   :  { %837 = dma.done.wait [#allocation4], 128  }
 0x3f5   :  { %838 = vsyncadd [#allocation4], 4294967168 }
 0x3f6   :  { %763 = vsyncpa [#allocation4], 1 }

</bundles_post_ra>
